<compile_context>
chip_gen: v5e
topology: v5e:2x2
jax: 0.10.0
libtpu: 0.0.40
codegen_flags: <defaults>
</compile_context>

<pallas_src>
import functools

import jax
import jax.numpy as jnp
from jax.experimental import pallas as pl
from jax.experimental.pallas import tpu as pltpu


# ----------------------------------------------------------------------------
# Fused Pallas kernel: stem matmul + folded BN2d + SiLU + GAP + folded head
# ----------------------------------------------------------------------------
def fused_kernel(p_ref, w_ref, shift_ref, wh_ref, bh_ref, o_ref, acc_ref, *,
                 inv_hw):
    """One (batch b, spatial-tile t) grid step.

    p_ref:     [1, THW, Kp]  bf16  im2col patches for image b, spatial tile t
    w_ref:     [Kp, Fp]      bf16  conv weight with BN2d scale folded in
    shift_ref: [1, Fp]       f32   folded BN2d shift (bias)
    wh_ref:    [Fp, Cp]      f32   head weight (BN1d + 1 folded into FC)
    bh_ref:    [1, Cp]       f32   head bias   (BN1d folded into FC)
    o_ref:     [1, 1, Cp]    f32   logits for image b (written on last tile)
    acc_ref:   [1, Fp]       f32   VMEM scratch: running per-image feature sum
    """
    t = pl.program_id(1)

    @pl.when(t == 0)
    def _init():
        acc_ref[...] = jnp.zeros_like(acc_ref)

    # Conv-as-matmul stem (bf16 operands, f32 accumulation on the MXU),
    # folded BatchNorm2d shift, SiLU.
    y = jnp.dot(p_ref[0], w_ref[...], preferred_element_type=jnp.float32)
    y = y + shift_ref[...]
    y = y * (1.0 / (1.0 + jnp.exp(-y)))                  # SiLU / swish

    # Fused global-average-pool: accumulate per-image feature sums.
    acc_ref[...] += jnp.sum(y, axis=0, keepdims=True)

    @pl.when(t == pl.num_programs(1) - 1)
    def _finalize():
        # GAP mean (1/HW is a compile-time constant) -> folded BN1d+FC head.
        pooled = acc_ref[...] * inv_hw                   # [1, Fp]
        logits = jnp.dot(pooled, wh_ref[...],
                         preferred_element_type=jnp.float32) + bh_ref[...]
        o_ref[0] = logits


# ----------------------------------------------------------------------------
# Host-side helpers
# ----------------------------------------------------------------------------
def _round_up(n, m):
    return ((n + m - 1) // m) * m


def _pick_tile(hw, target):
    """Largest divisor of hw that is a multiple of 8 and <= target."""
    cands = [d for d in range(8, min(hw, target) + 1, 8) if hw % d == 0]
    return max(cands) if cands else hw


def build_patches(x, kh, kw, stride, pad):
    """x: [B, C, H, W] (NCHW) -> patches [B, Ho*Wo, kh*kw*C], lane ordering (kh, kw, C)."""
    B, C, H, W = x.shape
    x_nhwc = jnp.transpose(x, (0, 2, 3, 1))              # small transpose of x only
    xp = jnp.pad(x_nhwc, ((0, 0), (pad, pad), (pad, pad), (0, 0)))
    Ho = (H + 2 * pad - kh) // stride + 1
    Wo = (W + 2 * pad - kw) // stride + 1
    cols = []
    for i in range(kh):
        for j in range(kw):
            cols.append(xp[:, i:i + stride * Ho:stride,
                           j:j + stride * Wo:stride, :])  # [B, Ho, Wo, C]
    patches = jnp.concatenate(cols, axis=-1)              # [B, Ho, Wo, kh*kw*C]
    return patches.reshape(B, Ho * Wo, kh * kw * C), Ho, Wo


def init_params(key, in_ch, num_features, num_classes, *, eps=1e-5):
    ks = jax.random.split(key, 12)
    kh = kw = 3
    K = in_ch * kh * kw

    # --- torch-layout parameters -------------------------------------------
    w_conv = 0.1 * jax.random.normal(ks[0], (num_features, in_ch, kh, kw),
                                     jnp.float32)         # OIHW, no bias
    bn2_gamma = 1.0 + 0.05 * jax.random.normal(ks[1], (num_features,), jnp.float32)
    bn2_beta = 0.05 * jax.random.normal(ks[2], (num_features,), jnp.float32)
    bn2_mean = 0.05 * jax.random.normal(ks[3], (num_features,), jnp.float32)
    bn2_var = 1.0 + 0.1 * jax.random.uniform(ks[4], (num_features,), jnp.float32)
    bn1_gamma = 1.0 + 0.05 * jax.random.normal(ks[5], (num_features,), jnp.float32)
    bn1_beta = 0.05 * jax.random.normal(ks[6], (num_features,), jnp.float32)
    bn1_mean = 0.05 * jax.random.normal(ks[7], (num_features,), jnp.float32)
    bn1_var = 1.0 + 0.1 * jax.random.uniform(ks[8], (num_features,), jnp.float32)
    fc_w = 0.1 * jax.random.normal(ks[9], (num_classes, num_features), jnp.float32)
    fc_b = 0.05 * jax.random.normal(ks[10], (num_classes,), jnp.float32)

    # --- fold BatchNorm2d (eval) into the conv weight -----------------------
    s2 = bn2_gamma * jax.lax.rsqrt(bn2_var + eps)          # [F]
    shift2 = bn2_beta - bn2_mean * s2                      # [F]
    # OIHW [F, C, kh, kw] -> [kh, kw, C, F] -> [K, F]; matches the (kh, kw, C)
    # lane ordering produced by build_patches().
    w_stem = jnp.transpose(w_conv, (2, 3, 1, 0)).reshape(K, num_features)
    w_stem = w_stem * s2[None, :]

    # --- fold BatchNorm1d (eval) into the FC layer ---------------------------
    s1 = bn1_gamma * jax.lax.rsqrt(bn1_var + eps)          # [F]
    t1 = bn1_beta - bn1_mean * s1                          # [F]
    w_head = s1[:, None] * fc_w.T                          # [F, NC]
    b_head = t1 @ fc_w.T + fc_b                            # [NC]

    # --- zero-pad to lane/sublane friendly sizes -----------------------------
    Kp = _round_up(K, 32)                                  # 27 -> 32
    Fp = _round_up(num_features, 128)
    Cp = _round_up(num_classes, 128)

    w_stem_p = jnp.zeros((Kp, Fp), jnp.float32).at[:K, :num_features].set(w_stem)
    shift_p = jnp.zeros((1, Fp), jnp.float32).at[0, :num_features].set(shift2)
    w_head_p = jnp.zeros((Fp, Cp), jnp.float32).at[:num_features, :num_classes].set(w_head)
    b_head_p = jnp.zeros((1, Cp), jnp.float32).at[0, :num_classes].set(b_head)

    params = dict(
        w_stem=w_stem_p.astype(jnp.bfloat16),              # bf16 MXU operand
        shift=shift_p,
        w_head=w_head_p,
        b_head=b_head_p,
        K=K, Kp=Kp, Fp=Fp, Cp=Cp,
        num_features=num_features, num_classes=num_classes,
    )
    # Unfolded torch-layout params kept around for the pure-JAX reference check.
    ref = dict(w_conv=w_conv,
               bn2=(bn2_gamma, bn2_beta, bn2_mean, bn2_var),
               bn1=(bn1_gamma, bn1_beta, bn1_mean, bn1_var),
               fc_w=fc_w, fc_b=fc_b, eps=eps)
    return params, ref


# ----------------------------------------------------------------------------
# Forward
# ----------------------------------------------------------------------------
def efficientnet_vehicle_forward(x, params, *, spatial_tile_target=512):
    """x: [B, C, H, W] float32 (NCHW, like the PyTorch module) -> [B, num_classes]."""
    B = x.shape[0]
    Kp, Fp, Cp = params["Kp"], params["Fp"], params["Cp"]
    NC = params["num_classes"]

    patches, Ho, Wo = build_patches(x, kh=3, kw=3, stride=2, pad=1)
    HW = Ho * Wo
    K = patches.shape[-1]
    # Zero-pad the contraction dim (27 -> 32) and cast the MXU operand to bf16.
    patches = jnp.pad(patches, ((0, 0), (0, 0), (0, Kp - K))).astype(jnp.bfloat16)

    # Spatial tile: biggest divisor of HW that is a multiple of 8 and fits the
    # target.  On v7x (64 MiB physical / 32 MiB default-scoped VMEM) keep
    # THW*(Kp+Fp)*bytes*2 (double-buffer) + weights well under budget.
    THW = _pick_tile(HW, spatial_tile_target)
    assert HW % THW == 0, "spatial extent must be divisible by the tile size"
    T = HW // THW

    kernel = functools.partial(fused_kernel, inv_hw=1.0 / HW)

    out3d = pl.pallas_call(
        kernel,
        out_shape=jax.ShapeDtypeStruct((B, 1, Cp), jnp.float32),
        grid_spec=pltpu.PrefetchScalarGridSpec(
            num_scalar_prefetch=0,
            grid=(B, T),
            in_specs=[
                pl.BlockSpec((1, THW, Kp), lambda b, t: (b, t, 0)),   # patches
                pl.BlockSpec((Kp, Fp), lambda b, t: (0, 0)),          # stem w
                pl.BlockSpec((1, Fp), lambda b, t: (0, 0)),           # bn shift
                pl.BlockSpec((Fp, Cp), lambda b, t: (0, 0)),          # head w
                pl.BlockSpec((1, Cp), lambda b, t: (0, 0)),           # head b
            ],
            out_specs=pl.BlockSpec((1, 1, Cp), lambda b, t: (b, 0, 0)),
            scratch_shapes=[pltpu.VMEM((1, Fp), jnp.float32)],
        ),
        compiler_params=pltpu.CompilerParams(
            # batch axis -> megacore-parallel (2 TCs on v7x); spatial axis is a
            # reduction (output block revisited) -> arbitrary.
            dimension_semantics=("parallel", "arbitrary")),
    )(patches, params["w_stem"], params["shift"], params["w_head"],
      params["b_head"])

    return out3d[:, 0, :NC]


# ----------------------------------------------------------------------------
# Pure-JAX reference (eval-mode PyTorch semantics) for a numerical sanity check
# ----------------------------------------------------------------------------
def reference_forward(x, ref):
    eps = ref["eps"]
    g2, b2, m2, v2 = ref["bn2"]
    g1, b1, m1, v1 = ref["bn1"]
    y = jax.lax.conv_general_dilated(
        x, ref["w_conv"], window_strides=(2, 2), padding=((1, 1), (1, 1)),
        dimension_numbers=("NCHW", "OIHW", "NCHW"))
    y = (y - m2[None, :, None, None]) * jax.lax.rsqrt(v2 + eps)[None, :, None, None]
    y = y * g2[None, :, None, None] + b2[None, :, None, None]
    y = y * jax.nn.sigmoid(y)                              # SiLU
    feats = jnp.mean(y, axis=(2, 3))                       # global average pool
    xn = (feats - m1[None, :]) * jax.lax.rsqrt(v1 + eps)[None, :]
    xn = xn * g1[None, :] + b1[None, :]                    # BatchNorm1d (eval)
    return xn @ ref["fc_w"].T + ref["fc_b"][None, :]       # Dropout = id, Linear


if __name__ == "__main__":
    key = jax.random.PRNGKey(0)
    k_x, k_p = jax.random.split(key)

    B, C, H, W = 2, 3, 32, 32          # small NCHW RGB images
    NUM_FEATURES = 32                  # stand-in for efficientnet_b0's 1280
    NUM_CLASSES = 8

    x = jax.random.normal(k_x, (B, C, H, W), jnp.float32)
    params, ref = init_params(k_p, C, NUM_FEATURES, NUM_CLASSES)

    # spatial_tile_target=128 so the toy HW=256 exercises the multi-tile
    # accumulate-and-finalize path; use ~512-1024 at real image sizes.
    logits = efficientnet_vehicle_forward(x, params, spatial_tile_target=128)
    jax.block_until_ready(logits)
    assert logits.shape == (B, NUM_CLASSES)

    expected = reference_forward(x, ref)
    err = float(jnp.max(jnp.abs(logits - expected)))
    assert err < 5e-2, f"max |err| = {err}"
    print("KERNEL_OK")
</pallas_src>

<mosaic_0001>
module attributes {stable_mosaic.version = 11 : i64} {
  func.func @fused_kernel(%arg0: i32, %arg1: i32, %arg2: memref<1x128x32xbf16, #tpu.memory_space<vmem>>, %arg3: memref<32x128xbf16, #tpu.memory_space<vmem>>, %arg4: memref<1x128xf32, #tpu.memory_space<vmem>>, %arg5: memref<128x128xf32, #tpu.memory_space<vmem>>, %arg6: memref<1x128xf32, #tpu.memory_space<vmem>>, %arg7: memref<1x1x128xf32, #tpu.memory_space<vmem>>, %arg8: memref<1x128xf32, #tpu.memory_space<vmem>>) attributes {dimension_semantics = [#tpu.dimension_semantics<parallel>, #tpu.dimension_semantics<arbitrary>], iteration_bounds = array<i64: 2, 2>, scalar_prefetch = 0 : i64, scratch_operands = 1 : i64, tpu.core_type = #tpu.core_type<tc>, window_params = [{transform_indices = @transform_0, window_bounds = array<i64: 1, 128, 32>}, {pipeline_mode = #tpu.pipeline_mode<synchronous>, transform_indices = @transform_1, window_bounds = array<i64: 32, 128>}, {pipeline_mode = #tpu.pipeline_mode<synchronous>, transform_indices = @transform_2, window_bounds = array<i64: 1, 128>}, {pipeline_mode = #tpu.pipeline_mode<synchronous>, transform_indices = @transform_3, window_bounds = array<i64: 128, 128>}, {pipeline_mode = #tpu.pipeline_mode<synchronous>, transform_indices = @transform_4, window_bounds = array<i64: 1, 128>}, {transform_indices = @transform_5, window_bounds = array<i64: 1, 1, 128>}]} {
    %c0_i32 = arith.constant 0 : i32
    %0 = arith.cmpi eq, %arg1, %c0_i32 : i32
    %1 = arith.extui %0 : i1 to i32
    %c0_i32_0 = arith.constant 0 : i32
    %2 = arith.cmpi ne, %1, %c0_i32_0 : i32
    scf.if %2 {
      %cst_16 = arith.constant 0.000000e+00 : f32
      %26 = vector.broadcast %cst_16 : f32 to vector<1x128xf32>
      %c0_17 = arith.constant 0 : index
      %c0_18 = arith.constant 0 : index
      %27 = vector.load %arg8[%c0_17, %c0_18] : memref<1x128xf32, #tpu.memory_space<vmem>>, vector<1x128xf32>
      tpu.vector_store %arg8[%c0_17, %c0_18], %26 {strides = array<i32>} : memref<1x128xf32, #tpu.memory_space<vmem>>, vector<1x128xf32>,
    } else {
    }
    %c0 = arith.constant 0 : index
    %c0_1 = arith.constant 0 : index
    %c0_2 = arith.constant 0 : index
    %3 = vector.load %arg2[%c0, %c0_1, %c0_2] : memref<1x128x32xbf16, #tpu.memory_space<vmem>>, vector<1x128x32xbf16>
    %4 = vector.shape_cast %3 : vector<1x128x32xbf16> to vector<128x32xbf16>
    %c0_3 = arith.constant 0 : index
    %c0_4 = arith.constant 0 : index
    %5 = vector.load %arg3[%c0_3, %c0_4] : memref<32x128xbf16, #tpu.memory_space<vmem>>, vector<32x128xbf16>
    %cst = arith.constant dense<0.000000e+00> : vector<128x128xf32>
    %6 = tpu.matmul %4, %5, %cst {dimension_numbers = #tpu.dot_dimension_numbers<[1], [0], [0], [1], [0, 0, 1, 1], [], []>} : vector<128x32xbf16>, vector<32x128xbf16>, vector<128x128xf32> -> vector<128x128xf32>
    %c0_5 = arith.constant 0 : index
    %c0_6 = arith.constant 0 : index
    %7 = vector.load %arg4[%c0_5, %c0_6] : memref<1x128xf32, #tpu.memory_space<vmem>>, vector<1x128xf32>
    %8 = vector.broadcast %7 : vector<1x128xf32> to vector<128x128xf32>
    %9 = arith.addf %6, %8 : vector<128x128xf32>
    %cst_7 = arith.constant 0.000000e+00 : f32
    %10 = vector.broadcast %cst_7 : f32 to vector<128x128xf32>
    %11 = arith.subf %10, %9 : vector<128x128xf32>
    %12 = math.exp %11 : vector<128x128xf32>
    %cst_8 = arith.constant 1.000000e+00 : f32
    %13 = vector.broadcast %cst_8 : f32 to vector<128x128xf32>
    %14 = arith.addf %13, %12 : vector<128x128xf32>
    %cst_9 = arith.constant 1.000000e+00 : f32
    %15 = vector.broadcast %cst_9 : f32 to vector<128x128xf32>
    %16 = arith.divf %15, %14 : vector<128x128xf32>
    %17 = arith.mulf %9, %16 : vector<128x128xf32>
    %c0_10 = arith.constant 0 : index
    %c0_11 = arith.constant 0 : index
    %18 = vector.load %arg8[%c0_10, %c0_11] : memref<1x128xf32, #tpu.memory_space<vmem>>, vector<1x128xf32>
    %cst_12 = arith.constant dense<0.000000e+00> : vector<128xf32>
    %19 = vector.multi_reduction <add>, %17, %cst_12 [0] : vector<128x128xf32> to vector<128xf32>
    %20 = vector.shape_cast %19 : vector<128xf32> to vector<1x128xf32>
    %21 = arith.addf %18, %20 : vector<1x128xf32>
    %c0_13 = arith.constant 0 : index
    %c0_14 = arith.constant 0 : index
    %22 = vector.load %arg8[%c0_13, %c0_14] : memref<1x128xf32, #tpu.memory_space<vmem>>, vector<1x128xf32>
    tpu.vector_store %arg8[%c0_13, %c0_14], %21 {strides = array<i32>} : memref<1x128xf32, #tpu.memory_space<vmem>>, vector<1x128xf32>,
    %c1_i32 = arith.constant 1 : i32
    %23 = arith.cmpi eq, %arg1, %c1_i32 : i32
    %24 = arith.extui %23 : i1 to i32
    %c0_i32_15 = arith.constant 0 : i32
    %25 = arith.cmpi ne, %24, %c0_i32_15 : i32
    scf.if %25 {
      %c0_16 = arith.constant 0 : index
      %c0_17 = arith.constant 0 : index
      %26 = vector.load %arg8[%c0_16, %c0_17] : memref<1x128xf32, #tpu.memory_space<vmem>>, vector<1x128xf32>
      %cst_18 = arith.constant 3.906250e-03 : f32
      %27 = vector.broadcast %cst_18 : f32 to vector<1x128xf32>
      %28 = arith.mulf %26, %27 : vector<1x128xf32>
      %c0_19 = arith.constant 0 : index
      %c0_20 = arith.constant 0 : index
      %29 = vector.load %arg5[%c0_19, %c0_20] : memref<128x128xf32, #tpu.memory_space<vmem>>, vector<128x128xf32>
      %cst_21 = arith.constant dense<0.000000e+00> : vector<1x128xf32>
      %30 = tpu.matmul %28, %29, %cst_21 {dimension_numbers = #tpu.dot_dimension_numbers<[1], [0], [0], [1], [0, 0, 1, 1], [], []>} : vector<1x128xf32>, vector<128x128xf32>, vector<1x128xf32> -> vector<1x128xf32>
      %c0_22 = arith.constant 0 : index
      %c0_23 = arith.constant 0 : index
      %31 = vector.load %arg6[%c0_22, %c0_23] : memref<1x128xf32, #tpu.memory_space<vmem>>, vector<1x128xf32>
      %32 = arith.addf %30, %31 : vector<1x128xf32>
      %c0_24 = arith.constant 0 : index
      %c0_25 = arith.constant 0 : index
      %c0_26 = arith.constant 0 : index
      %33 = vector.load %arg7[%c0_24, %c0_25, %c0_26] : memref<1x1x128xf32, #tpu.memory_space<vmem>>, vector<1x1x128xf32>
      %34 = vector.shape_cast %33 : vector<1x1x128xf32> to vector<1x128xf32>
      %35 = vector.shape_cast %32 : vector<1x128xf32> to vector<1x1x128xf32>
      tpu.vector_store %arg7[%c0_24, %c0_25, %c0_26], %35 {strides = array<i32>} : memref<1x1x128xf32, #tpu.memory_space<vmem>>, vector<1x1x128xf32>,
    } else {
    }
    return
  }
  func.func @transform_0(%arg0: i32, %arg1: i32) -> (i32, i32, i32) {
    %c0_i32 = arith.constant 0 : i32
    %c0_i32_0 = arith.constant 0 : i32
    return %arg0, %arg1, %c0_i32 : i32, i32, i32
  }
  func.func @transform_1(%arg0: i32, %arg1: i32) -> (i32, i32) {
    %c0_i32 = arith.constant 0 : i32
    %c0_i32_0 = arith.constant 0 : i32
    %c0_i32_1 = arith.constant 0 : i32
    return %c0_i32, %c0_i32_0 : i32, i32
  }
  func.func @transform_2(%arg0: i32, %arg1: i32) -> (i32, i32) {
    %c0_i32 = arith.constant 0 : i32
    %c0_i32_0 = arith.constant 0 : i32
    %c0_i32_1 = arith.constant 0 : i32
    return %c0_i32, %c0_i32_0 : i32, i32
  }
  func.func @transform_3(%arg0: i32, %arg1: i32) -> (i32, i32) {
    %c0_i32 = arith.constant 0 : i32
    %c0_i32_0 = arith.constant 0 : i32
    %c0_i32_1 = arith.constant 0 : i32
    return %c0_i32, %c0_i32_0 : i32, i32
  }
  func.func @transform_4(%arg0: i32, %arg1: i32) -> (i32, i32) {
    %c0_i32 = arith.constant 0 : i32
    %c0_i32_0 = arith.constant 0 : i32
    %c0_i32_1 = arith.constant 0 : i32
    return %c0_i32, %c0_i32_0 : i32, i32
  }
  func.func @transform_5(%arg0: i32, %arg1: i32) -> (i32, i32, i32) {
    %c0_i32 = arith.constant 0 : i32
    %c0_i32_0 = arith.constant 0 : i32
    %c0_i32_1 = arith.constant 0 : i32
    return %arg0, %c0_i32, %c0_i32_0 : i32, i32, i32
  }
}

</mosaic_0001>

<bundles_post_ra>
// kernel: tpu_custom_call.1
= control target key start
LH: loop header
LB: loop body
LE: loop exit
PB: predicated region body
PF: predicated region fallthrough
CT: control target
= control target key end

     0   :  { %10 = vsyncpa [#allocation4], 0  ;;  %s1933_s0 = inlined_call_operand.vmem [shape: bf16[2,256,32], index: 0, kind: input, shape index: {}]   ;;  %s1934_s1 = inlined_call_operand.vmem [shape: bf16[32,128], index: 1, kind: input, shape index: {}]   ;;  %s1935_s2 = inlined_call_operand.vmem [shape: f32[1,128], index: 2, kind: input, shape index: {}]   ;;  %s1936_s3 = inlined_call_operand.vmem [shape: f32[128,128], index: 3, kind: input, shape index: {}]   ;;  %s1937_s4 = inlined_call_operand.vmem [shape: f32[1,128], index: 4, kind: input, shape index: {}]   ;;  %s1938_s5 = inlined_call_operand.hbm [shape: f32[2,1,128], index: 5, kind: output, shape index: {}]  }
   0x1   :  { %12 = vsyncpa [#allocation4 + $0x1], 0  ;;  %s1219_s18 = smov 0   ;;  %s1221_s19 = smov 0  }
   0x2   :  { %s1223_s20 = smov 0   ;;  %s1225_s21 = smov 0  }
   0x3   :  { %s1227_s22 = smov 0   ;;  %s1229_s23 = smov 0  }
   0x4   :  { %s1231_s24 = smov 0   ;;  %s1233_s25 = smov 0  }
   0x5 LB: > { %s879_s26 = sadd.s32 4294967295, %s1186_s25   ;;  %s880_s27 = sadd.s32 4294967294, %s1186_s25   ;;  %s1186_s25 = sphi %s1233_s25, %s18_s25   ;;  %s1182_s24 = sphi %s1231_s24, %s1993_s24   ;;  %s1178_s23 = sphi %s1229_s23, %s1992_s23   ;;  %s1174_s22 = sphi %s1227_s22, %s1991_s22   ;;  %s1170_s21 = sphi %s1225_s21, %s1990_s21   ;;  %s1166_s20 = sphi %s1223_s20, %s1989_s20   ;;  %s1162_s19 = sphi %s1221_s19, %s1988_s19   ;;  %s1158_s18 = sphi %s1219_s18, %s1987_s18  }
   0x6   : > { %s27_s28 = sadd.s32 1, %s1178_s23  ;;  %s30_s29 = sadd.s32 1, %s1182_s24 }
   0x7   : > { %p28_p0 = scmp.ge.s32.totalorder %s27_s28, 2  ;;  %p159_p1 = scmp.ne.s32.totalorder %s1166_s20, %s1162_s19 }
   0x8   : > { %p160_p2 = scmp.eq.s32.totalorder %s879_s26, 3  ;;  %p165_p4 = scmp.ne.s32.totalorder %s1162_s19, %s1158_s18 }
   0x9   : > { %s1995_s28 = smov (%p28_p0, %s27_s28), 0  ;;  %s1997_s29 = smov (!%p28_p0, %s30_s29), %s1182_s24 }
   0xa   : > { %p1268_p3 = por %p160_p2, %p159_p1  ;;  %p32_p5 = scmp.ge.s32.totalorder %s1997_s29, 2 }
   0xb   : > { %p166_p6 = scmp.eq.s32.totalorder %s880_s27, 3  ;;  %p883_p7 = scmp.ge.s32.totalorder %s1186_s25, 1 }
   0xc   : > { %p209_p8 = scmp.lt.s32.totalorder %s1186_s25, 5  ;;  %s1999_s29 = smov (%p32_p5, %s1997_s29), 0 }
   0xd   : > { %p1278_p9 = por %p166_p6, %p165_p4  ;;  %s146_s7 = ssub.s32 %s1182_s24, %s1999_s29 }
   0xe   : > { %p210_p10 = pnand %p883_p7, %p209_p8  ;;  %s149_s8 = sadd.s32 1, %s1166_s20 }
   0xf   : > { %p147_p11 = scmp.eq.s32.totalorder %s146_s7, 0  ;;  %s238_s10 = sand.u32 (!%p210_p10), 1, %s1162_s19  }
  0x10   : > { %213 = sbr.rel (%p210_p10) target bundleno = 449 (0x1c1), region = 40  ;;  %s884_s11 = sshll.u32 (!%p210_p10), %s1170_s21, 4 }
  0x11   : > { %s1286_s9 = scalar_select %p147_p11, %s1166_s20, %s149_s8  }
  0x12   : > { %p241_p12 = scmp.lt.s32.totalorder (!%p210_p10), %s1174_s22, 1  ;;  %p243_p13 = scmp.lt.s32.totalorder (!%p210_p10), %s884_s11, 31 }
  0x13   : > { %s1297_s27 = scalar_lea.vmem (!%p210_p10), [#allocation3], %s238_s10  ;;  %p887_p0 = scmp.ne.s32.totalorder (!%p210_p10), %s1170_s21, 0 }
  0x15   : > { %s242_s12 = scalar_select %p241_p12, %s1174_s22, 1 }
  0x16   : > { %s2001_s11 = smov (!%p243_p13, %s884_s11), 31  ;;  %254 = sbr.rel (%p887_p0) target bundleno = 29 (0x1d), region = 44 }
  0x17   : > { %s885_s13 = sshll.u32 %s242_s12, 5 }
  0x18   : > { %s246_s14 = sadd.s32 %s885_s13, %s2001_s11 }
  0x19   : > { %s886_s15 = sshll.u32 %s246_s14, 2 }
  0x1a   : > { %s248_s26 = scalar_lea.vmem %s1933_s0, %s886_s15 }
  0x1b   : > { %v1188_v0 = vmov 0.0  }
  0x1c   : > { %255 = vst [vmem:[#allocation2] sm:$0x1] %v1188_v0 }
  0x1d PF: > { %v948_v1 = vld [vmem:[%s1934_s1 + $0x8] sm:$0xff]  ;;  %v947_v2 = vld [vmem:[%s1934_s1] sm:$0xff]  ;;  %v941_v4 = vld [vmem:[%s248_s26 + $0x10] sm:$0xff]  ;;  %vm332_vm0 = vcmask 261120   ;;  %p936_p1 = scmp.ne.s32.totalorder %s1170_s21, 1 }
  0x1e   : > { %363 = vmatpush.bf16.msra.mxu0 %v948_v1  ;;  %949 = vmatpush.bf16.msra.mxu1 %v948_v1  ;;  %v939_v3 = vld [vmem:[%s248_s26] sm:$0xff]  ;;  %v945_v6 = vld [vmem:[%s248_s26 + $0x30] sm:$0xff]  ;;  %v940_v7 = vld [vmem:[%s248_s26 + $0x8] sm:$0xff] }
  0x1f   : > { %950 = vmatpush.bf16.msra.mxu2 %v948_v1  ;;  %951 = vmatpush.bf16.msra.mxu3 %v948_v1  ;;  %v943_v5 = vld [vmem:[%s248_s26 + $0x20] sm:$0xff]  ;;  %v942_v8 = vld [vmem:[%s248_s26 + $0x18] sm:$0xff]  ;;  %v944_v9 = vld [vmem:[%s248_s26 + $0x28] sm:$0xff] }
  0x20   : > { %v946_v10 = vld [vmem:[%s248_s26 + $0x38] sm:$0xff]  ;;  %v1317_v11 = vld [vmem:[%s1935_s2] ss:$0 sm:$0xff] }
  0x22   : > { %364 = vmatpush.bf16.msra.mxu0 %v947_v2  ;;  %952 = vmatpush.bf16.msra.mxu1 %v947_v2 }
  0x23   : > { %953 = vmatpush.bf16.msra.mxu2 %v947_v2  ;;  %954 = vmatpush.bf16.msra.mxu3 %v947_v2 }
  0x25   : > { %928 = vmatmul.msk.bf16.vlgmr.msra.gmra.mxu0 %vm332_vm0, %v939_v3  ;;  %930 = vmatmul.msk.bf16.vlgmr.msra.gmra.mxu1 %vm332_vm0, %v941_v4 }
  0x26   : > { %932 = vmatmul.msk.bf16.vlgmr.msra.gmra.mxu2 %vm332_vm0, %v943_v5  ;;  %934 = vmatmul.msk.bf16.vlgmr.msra.gmra.mxu3 %vm332_vm0, %v945_v6 }
  0x35   : > { %929 = vmatmul.msk.bf16.gmra.mxu0 %vm332_vm0, %v940_v7  ;;  %931 = vmatmul.msk.bf16.gmra.mxu1 %vm332_vm0, %v942_v8 }
  0x36   : > { %933 = vmatmul.msk.bf16.gmra.mxu2 %vm332_vm0, %v944_v9  ;;  %935 = vmatmul.msk.bf16.gmra.mxu3 %vm332_vm0, %v946_v10 }
  0xa2   : > { %v366_v12 = vpop.f32.mrf.mxu0  ;;  %v376_v13 = vpop.f32.mrf.mxu1 }
  0xa3   : > { %v1320_v14 = vadd.f32 %v1317_v11, %v366_v12  ;;  %v1323_v15 = vadd.f32 %v1317_v11, %v376_v13 }
  0xa5   : > { %v406_v16 = vsub.f32 0.0, %v1320_v14  ;;  %v410_v17 = vsub.f32 0.0, %v1323_v15 }
  0xa7   : > { %v422_v19 = vmul.f32 1.442695, %v406_v16  ;;  %v430_v21 = vmul.f32 1.442695, %v410_v17 }
  0xa9   : > { %v386_v18 = vpop.f32.mrf.mxu2  ;;  %1028 = vpow2.f32 %v422_v19  ;;  %v396_v26 = vpop.f32.mrf.mxu3 }
  0xaa   : > { %v368_v20 = vpop.f32.mrf.mxu0  ;;  %v1328_v22 = vadd.f32 %v1317_v11, %v386_v18  ;;  %1030 = vpow2.f32 %v430_v21  ;;  %v378_v25 = vpop.f32.mrf.mxu1  ;;  %v1339_v30 = vadd.f32 %v1317_v11, %v396_v26 }
  0xab   : > { %v1331_v23 = vadd.f32 %v1317_v11, %v368_v20  ;;  %v1336_v28 = vadd.f32 %v1317_v11, %v378_v25 }
  0xac   : > { %v414_v24 = vsub.f32 0.0, %v1328_v22  ;;  %v418_v36 = vsub.f32 0.0, %v1339_v30 }
  0xad   : > { %v407_v27 = vsub.f32 0.0, %v1331_v23  ;;  %v411_v34 = vsub.f32 0.0, %v1336_v28 }
  0xae   : > { %v438_v29 = vmul.f32 1.442695, %v414_v24  ;;  %v446_v41 = vmul.f32 1.442695, %v418_v36 }
  0xaf   : > { %v1029_v31 = vpop.eup %1028  ;;  %v424_v33 = vmul.f32 1.442695, %v407_v27  ;;  %v432_v39 = vmul.f32 1.442695, %v411_v34 }
  0xb0   : > { %v1031_v32 = vpop.eup %1030  ;;  %v1342_v35 = vadd.f32 1.0, %v1029_v31  ;;  %1032 = vpow2.f32 %v438_v29 }
  0xb1   : > { %v1345_v37 = vadd.f32 1.0, %v1031_v32  ;;  %v388_v38 = vpop.f32.mrf.mxu2  ;;  %1034 = vpow2.f32 %v424_v33  ;;  %v398_v47 = vpop.f32.mrf.mxu3 }
  0xb2   : > { %v371_v40 = vpop.f32.mrf.mxu0  ;;  %1036 = vrcp.f32 %v1342_v35  ;;  %v1349_v42 = vadd.f32 %v1317_v11, %v388_v38  ;;  %v381_v49 = vpop.f32.mrf.mxu1  ;;  %v481_v61 = vand.u32 2147483648, %v1342_v35  ;;  %v1381_v3 = vadd.f32 %v1317_v11, %v398_v47 }
  0xb3   : > { %1038 = vrcp.f32 %v1345_v37  ;;  %v1353_v44 = vadd.f32 %v1317_v11, %v371_v40  ;;  %v1366_v55 = vadd.f32 %v1317_v11, %v381_v49  ;;  %v541_v5 = vand.u32 2147483648, %v1345_v37 }
  0xb4   : > { %1040 = vpow2.f32 %v432_v39  ;;  %v415_v46 = vsub.f32 0.0, %v1349_v42  ;;  %vm475_vm1 = vweird.f32 %v1342_v35  ;;  %v479_v8 = vand.u32 2147483647, %v1342_v35 }
  0xb5   : > { %1042 = vpow2.f32 %v446_v41  ;;  %v408_v51 = vsub.f32 0.0, %v1353_v44  ;;  %v412_v63 = vsub.f32 0.0, %v1366_v55  ;;  %v1388_v9 = vor.u32 1.1754944e-38, %v481_v61 }
  0xb6   : > { %v1033_v43 = vpop.eup %1032  ;;  %v440_v54 = vmul.f32 1.442695, %v415_v46  ;;  %vm535_vm2 = vweird.f32 %v1345_v37  ;;  %v539_v10 = vand.u32 2147483647, %v1345_v37  ;;  %v419_v21 = vsub.f32 0.0, %v1381_v3 }
  0xb7   : > { %v1035_v45 = vpop.eup %1034  ;;  %v1356_v48 = vadd.f32 1.0, %v1033_v43  ;;  %v426_v60 = vmul.f32 1.442695, %v408_v51  ;;  %v434_v13 = vmul.f32 1.442695, %v412_v63  ;;  %v542_v26 = vor.u32 1.1754944e-38, %v541_v5 }
  0xb8   : > { %v1358_v50 = vpop.eup %1036  ;;  %v1363_v53 = vadd.f32 1.0, %v1035_v45  ;;  %vm1407_vm4 = vcmp.eq.f32.partialorder %v479_v8, 8.507059e+37  ;;  %vm1417_vm6 = vcmp.eq.f32.partialorder %v539_v10, 8.507059e+37  ;;  %v448_v46 = vmul.f32 1.442695, %v419_v21 }
  0xb9   : > { %v1361_v52 = vpop.eup %1038  ;;  %v471_v57 = vmul.f32 %v1358_v50, %v1342_v35  ;;  %1044 = vrcp.f32 %v1356_v48  ;;  %v391_v0 = vpop.f32.mrf.mxu2  ;;  %v601_v12 = vand.u32 2147483648, %v1356_v48  ;;  %vm476_vm3 = vweird.f32 %v1358_v50 }
  0xba   : > { %v1041_v56 = vpop.eup %1040  ;;  %v531_v59 = vmul.f32 %v1361_v52, %v1345_v37  ;;  %1046 = vrcp.f32 %v1363_v53  ;;  %v401_v6 = vpop.f32.mrf.mxu3  ;;  %v1395_v16 = vadd.f32 %v1317_v11, %v391_v0  ;;  %vm536_vm5 = vweird.f32 %v1361_v52  ;;  %vm1449_vm9 = vmor %vm475_vm1, %vm476_vm3 }
  0xbb   : > { %v1043_v58 = vpop.eup %1042  ;;  %v1375_v62 = vadd.f32 1.0, %v1041_v56  ;;  %1048 = vpow2.f32 %v440_v54  ;;  %v472_v1 = vsub.f32 1.0, %v471_v57  ;;  %v373_v17 = vpop.f32.mrf.mxu0  ;;  %v599_v31 = vand.u32 2147483647, %v1356_v48  ;;  %vm1465_vm10 = vmor %vm535_vm2, %vm536_vm5 }
  0xbc   : > { %v1378_v2 = vadd.f32 1.0, %v1043_v58  ;;  %v532_v4 = vsub.f32 1.0, %v531_v59  ;;  %1050 = vpow2.f32 %v426_v60  ;;  %v1415_v33 = vadd.f32 %v1317_v11, %v373_v17  ;;  %v383_v47 = vpop.f32.mrf.mxu1 }
  0xbd   : > { %1052 = vrcp.f32 %v1375_v62  ;;  %v473_v19 = vmul.f32 %v1358_v50, %v472_v1  ;;  %v1421_v38 = vor.u32 1.1754944e-38, %v601_v12  ;;  %v416_v40 = vsub.f32 0.0, %v1395_v16 }
  0xbe   : > { %1054 = vrcp.f32 %v1378_v2  ;;  %v661_v20 = vand.u32 2147483648, %v1378_v2  ;;  %v533_v25 = vmul.f32 %v1361_v52, %v532_v4  ;;  %v659_v32 = vand.u32 2147483647, %v1378_v2 }
  0xbf   : > { %v1384_v7 = vpop.eup %1044  ;;  %1056 = vpow2.f32 %v434_v13  ;;  %v474_v41 = vadd.f32 %v1358_v50, %v473_v19  ;;  %v1437_v57 = vadd.f32 %v1317_v11, %v401_v6  ;;  %vm595_vm7 = vweird.f32 %v1356_v48 }
  0xc0   : > { %v1397_v18 = vpop.eup %1046  ;;  %v591_v27 = vmul.f32 %v1384_v7, %v1356_v48  ;;  %v1427_v43 = vor.u32 1.1754944e-38, %v661_v20  ;;  %v534_v51 = vadd.f32 %v1361_v52, %v533_v25  ;;  %vm596_vm8 = vweird.f32 %v1384_v7 }
  0xc1   : > { %v1049_v24 = vpop.eup %1048  ;;  %v486_v39 = vmul.f32 %v1397_v18, %v1363_v53  ;;  %v393_v58 = vpop.f32.mrf.mxu2  ;;  %v494_v60 = vand.u32 2147483647, %v1363_v53  ;;  %v442_v61 = vmul.f32 1.442695, %v416_v40  ;;  %v409_v63 = vsub.f32 0.0, %v1415_v33  ;;  %vm1527_vm1 = vmor %vm595_vm7, %vm596_vm8 }
  0xc2   : > { %v1051_v34 = vpop.eup %1050  ;;  %v1429_v45 = vadd.f32 1.0, %v1049_v24  ;;  %v592_v54 = vsub.f32 1.0, %v591_v27  ;;  %v496_v4 = vand.u32 2147483648, %v1363_v53  ;;  %v1456_v5 = vadd.f32 %v1317_v11, %v383_v47  ;;  %v403_v6 = vpop.f32.mrf.mxu3 }
  0xc3   : > { %v1431_v49 = vpop.eup %1052  ;;  %v1434_v56 = vadd.f32 1.0, %v1051_v34  ;;  %v487_v1 = vsub.f32 1.0, %v486_v39  ;;  %v478_v8 = vsel %vm1449_vm9, %v1358_v50, %v474_v41  ;;  %v1473_v12 = vadd.f32 %v1317_v11, %v393_v58 }
  0xc4   : > { %v1439_v59 = vpop.eup %1054  ;;  %v546_v10 = vmul.f32 %v1431_v49, %v1375_v62  ;;  %v538_v50 = vsel %vm1465_vm10, %v1361_v52, %v534_v51  ;;  %v593_v17 = vmul.f32 %v1384_v7, %v592_v54  ;;  %vm490_vm11 = vweird.f32 %v1363_v53 }
  0xc5   : > { %1058 = vrcp.f32 %v1434_v56  ;;  %v1057_v13 = vpop.eup %1056  ;;  %v651_v37 = vmul.f32 %v1439_v59, %v1378_v2  ;;  %v420_v19 = vsub.f32 0.0, %v1437_v57  ;;  %v428_v21 = vmul.f32 1.442695, %v409_v63 }
  0xc6   : > { %1060 = vrcp.f32 %v1429_v45  ;;  %v1483_v20 = vadd.f32 1.0, %v1057_v13  ;;  %v1486_v24 = vadd.f32 %v1317_v11, %v403_v6  ;;  %v483_v52 = vsel %vm1407_vm4, %v1388_v9, %v478_v8 }
  0xc7   : > { %1062 = vpow2.f32 %v442_v61  ;;  %vm655_vm12 = vweird.f32 %v1378_v2  ;;  %v488_v25 = vmul.f32 %v1397_v18, %v487_v1  ;;  %v413_v27 = vsub.f32 0.0, %v1456_v5 }
  0xc8   : > { %1064 = vpow2.f32 %v448_v46  ;;  %v543_v34 = vsel %vm1417_vm6, %v542_v26, %v538_v50  ;;  %vm1496_vm13 = vcmp.eq.f32.partialorder %v599_v31, 8.507059e+37  ;;  %v547_v11 = vsub.f32 1.0, %v546_v10 }
  0xc9   : > { %1066 = vrcp.f32 %v1483_v20  ;;  %v417_v29 = vsub.f32 0.0, %v1473_v12  ;;  %v652_v40 = vsub.f32 1.0, %v651_v37  ;;  %vm1504_vm14 = vcmp.eq.f32.partialorder %v494_v60, 8.507059e+37 }
  0xca   : > { %v554_v46 = vand.u32 2147483647, %v1375_v62  ;;  %1068 = vpow2.f32 %v428_v21  ;;  %v436_v26 = vmul.f32 1.442695, %v413_v27  ;;  %v594_v36 = vadd.f32 %v1384_v7, %v593_v17 }
  0xcb   : > { %v1502_v9 = vpop.eup %1058  ;;  %vm550_vm15 = vweird.f32 %v1375_v62  ;;  %v450_v51 = vmul.f32 1.442695, %v420_v19  ;;  %v421_v54 = vsub.f32 0.0, %v1486_v24  ;;  %v489_v58 = vadd.f32 %v1397_v18, %v488_v25 }
  0xcc   : > { %v1509_v31 = vpop.eup %1060  ;;  %v501_v47 = vmul.f32 %v1502_v9, %v1434_v56  ;;  %vm491_vm0 = vweird.f32 %v1397_v18  ;;  %v556_v60 = vand.u32 2147483648, %v1375_v62  ;;  %1070 = vpow2.f32 %v436_v26 }
  0xcd   : > { %v1063_v61 = vpop.eup %1062  ;;  %v1520_v63 = vmul.f32 %v483_v52, %v1320_v14  ;;  %v548_v0 = vmul.f32 %v1431_v49, %v547_v11  ;;  %v444_v6 = vmul.f32 1.442695, %v417_v29  ;;  %v653_v10 = vmul.f32 %v1439_v59, %v652_v40  ;;  %vm1553_vm4 = vmor %vm490_vm11, %vm491_vm0 }
  0xce   : > { %v502_v1 = vsub.f32 1.0, %v501_v47  ;;  %v1065_v8 = vpop.eup %1064  ;;  %vm656_vm2 = vweird.f32 %v1439_v59  ;;  %vm1535_vm3 = vcmp.eq.f32.partialorder %v659_v32, 8.507059e+37  ;;  %v497_v13 = vor.u32 1.1754944e-38, %v496_v4 }
  0xcf   : > { %v606_v50 = vmul.f32 %v1509_v31, %v1429_v45  ;;  %v1541_v17 = vpop.eup %1066  ;;  %v1544_v48 = vmul.f32 %v543_v34, %v1323_v15  ;;  %v598_v37 = vsel %vm1527_vm1, %v1384_v7, %v594_v36  ;;  %1072 = vpow2.f32 %v450_v51  ;;  %vm1579_vm7 = vmor %vm655_vm12, %vm656_vm2 }
  0xd0   : > { %v452_v4 = vmul.f32 1.442695, %v421_v54  ;;  %v1069_v19 = vpop.eup %1068  ;;  %v493_v15 = vsel %vm1553_vm4, %v1397_v18, %v489_v58  ;;  %vm1560_vm5 = vcmp.eq.f32.partialorder %v554_v46, 8.507059e+37  ;;  %v557_v7 = vor.u32 1.1754944e-38, %v556_v60 }
  0xd1   : > { %v1564_v52 = vadd.f32 1.0, %v1063_v61  ;;  %v549_v53 = vadd.f32 %v1431_v49, %v548_v0  ;;  %vm551_vm6 = vweird.f32 %v1431_v49  ;;  %v503_v25 = vmul.f32 %v1502_v9, %v502_v1 }
  0xd2   : > { %1074 = vpow2.f32 %v444_v6  ;;  %v1071_v27 = vpop.eup %1070  ;;  %v603_v34 = vsel %vm1496_vm13, %v1421_v38, %v598_v37  ;;  %v654_v18 = vadd.f32 %v1439_v59, %v653_v10  ;;  %v607_v11 = vsub.f32 1.0, %v606_v50  ;;  %vm1591_vm8 = vmor %vm550_vm15, %vm551_vm6 }
  0xd3   : > { %v1573_v29 = vadd.f32 1.0, %v1069_v19  ;;  %v498_v46 = vsel %vm1504_vm14, %v497_v13, %v493_v15  ;;  %v561_v39 = vmul.f32 %v1541_v17, %v1483_v20  ;;  %v1587_v38 = vadd.f32 1.0, %v1071_v27 }
  0xd4   : > { %1076 = vpow2.f32 %v452_v4  ;;  %v614_v2 = vand.u32 2147483647, %v1429_v45  ;;  %v616_v36 = vand.u32 2147483648, %v1429_v45  ;;  %v1597_v47 = vadd.f32 1.0, %v1065_v8 }
  0xd5   : > { %1078 = vrcp.f32 %v1564_v52  ;;  %v1073_v41 = vpop.eup %1072  ;;  %v553_v51 = vsel %vm1591_vm8, %v1431_v49, %v549_v53  ;;  %v504_v54 = vadd.f32 %v1502_v9, %v503_v25  ;;  %vm506_vm9 = vweird.f32 %v1502_v9 }
  0xd6   : > { %1080 = vrcp.f32 %v1573_v29  ;;  %v658_v62 = vsel %vm1579_vm7, %v1439_v59, %v654_v18  ;;  %v711_v58 = vmul.f32 %v498_v46, %v1331_v23  ;;  %v608_v60 = vmul.f32 %v1509_v31, %v607_v11 }
  0xd7   : > { %v511_v61 = vand.u32 2147483648, %v1434_v56  ;;  %vm610_vm10 = vweird.f32 %v1429_v45  ;;  %vm505_vm11 = vweird.f32 %v1434_v56  ;;  %v509_v49 = vand.u32 2147483647, %v1434_v56 }
  0xd8   : > { %v1075_v0 = vpop.eup %1074  ;;  %v562_v1 = vsub.f32 1.0, %v561_v39  ;;  %1082 = vrcp.f32 %v1587_v38  ;;  %v1617_v6 = vmul.f32 %v603_v34, %v1328_v22  ;;  %v558_v23 = vsel %vm1560_vm5, %v557_v7, %v553_v51  ;;  %vm1624_vm12 = vmor %vm505_vm11, %vm506_vm9 }
  0xd9   : > { %1084 = vrcp.f32 %v1597_v47  ;;  %v1628_v8 = vadd.f32 1.0, %v1073_v41  ;;  %v1633_v35 = vsel %vm1535_vm3, %v1427_v43, %v658_v62  ;;  %vm611_vm13 = vweird.f32 %v1509_v31 }
  0xda   : > { %v1077_v56 = vpop.eup %1076  ;;  %v1636_v22 = vor.u32 1.1754944e-38, %v616_v36  ;;  %v508_v10 = vsel %vm1624_vm12, %v1502_v9, %v504_v54  ;;  %v727_v50 = vadd.f32 %v711_v58, %v1520_v63  ;;  %v674_v37 = vand.u32 2147483647, %v1597_v47  ;;  %vm1679_vm1 = vmor %vm610_vm10, %vm611_vm13 }
  0xdb   : > { %v1641_v13 = vpop.eup %1078  ;;  %v512_v32 = vor.u32 1.1754944e-38, %v511_v61  ;;  %v1645_v4 = vadd.f32 1.0, %v1075_v0  ;;  %v1648_v43 = vmul.f32 %v558_v23, %v1336_v28  ;;  %v1651_v19 = vadd.f32 %v1509_v31, %v608_v60 }
  0xdc   : > { %v1081_v14 = vpop.eup %1080  ;;  %vm510_vm14 = vcmp.eq.f32.partialorder %v509_v49, 8.507059e+37  ;;  %v563_v15 = vmul.f32 %v1541_v17, %v562_v1  ;;  %1086 = vrcp.f32 %v1628_v8  ;;  %v1656_v21 = vadd.f32 1.0, %v1077_v56 }
  0xdd   : > { %v513_v9 = vsel %vm510_vm14, %v512_v32, %v508_v10  ;;  %v516_v63 = vmul.f32 %v1081_v14, %v1573_v29  ;;  %vm565_vm15 = vweird.f32 %v1483_v20  ;;  %v569_v28 = vand.u32 2147483647, %v1483_v20 }
  0xde   : > { %v1658_v7 = vpop.eup %1082  ;;  %v621_v53 = vmul.f32 %v1641_v13, %v1564_v52  ;;  %1088 = vrcp.f32 %v1645_v4  ;;  %vm566_vm0 = vweird.f32 %v1541_v17  ;;  %v571_v27 = vand.u32 2147483648, %v1483_v20 }
  0xdf   : > { %v1665_v25 = vpop.eup %1084  ;;  %v517_v34 = vsub.f32 1.0, %v516_v63  ;;  %v576_v18 = vmul.f32 %v1658_v7, %v1587_v38  ;;  %v712_v11 = vmul.f32 %v513_v9, %v1353_v44  ;;  %v564_v40 = vadd.f32 %v1541_v17, %v563_v15  ;;  %vm1706_vm5 = vmor %vm565_vm15, %vm566_vm0 }
  0xe0   : > { %v524_v46 = vand.u32 2147483647, %v1573_v29  ;;  %v526_v39 = vand.u32 2147483648, %v1573_v29  ;;  %vm521_vm2 = vweird.f32 %v1081_v14  ;;  %1090 = vrcp.f32 %v1656_v21 }
  0xe1   : > { %v518_v36 = vmul.f32 %v1081_v14, %v517_v34  ;;  %v577_v41 = vsub.f32 1.0, %v576_v18  ;;  %v613_v44 = vsel %vm1679_vm1, %v1509_v31, %v1651_v19  ;;  %vm1690_vm3 = vcmp.eq.f32.partialorder %v614_v2, 8.507059e+37 }
  0xe2   : > { %v666_v54 = vmul.f32 %v1665_v25, %v1597_v47  ;;  %vm1696_vm4 = vcmp.eq.f32.partialorder %v569_v28, 8.507059e+37  ;;  %v622_v58 = vsub.f32 1.0, %v621_v53  ;;  %v1700_v60 = vpop.eup %1086  ;;  %v572_v31 = vor.u32 1.1754944e-38, %v571_v27 }
  0xe3   : > { %v519_v2 = vadd.f32 %v1081_v14, %v518_v36  ;;  %vm520_vm6 = vweird.f32 %v1573_v29  ;;  %v578_v61 = vmul.f32 %v1658_v7, %v577_v41  ;;  %v728_v49 = vadd.f32 %v727_v50, %v712_v11 }
  0xe4   : > { %v1712_v0 = vpop.eup %1088  ;;  %v568_v1 = vsel %vm1706_vm5, %v1541_v17, %v564_v40  ;;  %vm522_vm7 = vmor %vm520_vm6, %vm521_vm2  ;;  %vm525_vm8 = vcmp.eq.f32.partialorder %v524_v46, 8.507059e+37  ;;  %v527_v20 = vor.u32 1.1754944e-38, %v526_v39  ;;  %vm581_vm9 = vweird.f32 %v1658_v7 }
  0xe5   : > { %v523_v23 = vsel %vm522_vm7, %v1081_v14, %v519_v2  ;;  %v579_v59 = vadd.f32 %v1658_v7, %v578_v61  ;;  %v636_v29 = vmul.f32 %v1712_v0, %v1645_v4  ;;  %v623_v56 = vmul.f32 %v1641_v13, %v622_v58 }
  0xe6   : > { %v681_v10 = vmul.f32 %v1700_v60, %v1628_v8  ;;  %v528_v50 = vsel %vm525_vm8, %v527_v20, %v523_v23  ;;  %v586_v17 = vand.u32 2147483648, %v1587_v38  ;;  %v1726_v32 = vpop.eup %1090  ;;  %vm580_vm10 = vweird.f32 %v1587_v38 }
  0xe7   : > { %v713_v19 = vmul.f32 %v528_v50, %v1415_v33  ;;  %v584_v14 = vand.u32 2147483647, %v1587_v38  ;;  %v637_v15 = vsub.f32 1.0, %v636_v29  ;;  %v667_v9 = vsub.f32 1.0, %v666_v54  ;;  %vm1738_vm13 = vmor %vm580_vm10, %vm581_vm9 }
  0xe8   : > { %vm670_vm11 = vweird.f32 %v1597_v47  ;;  %v573_v63 = vsel %vm1696_vm4, %v572_v31, %v568_v1  ;;  %vm625_vm12 = vweird.f32 %v1564_v52  ;;  %v631_v28 = vand.u32 2147483648, %v1564_v52 }
  0xe9   : > { %v729_v33 = vadd.f32 %v728_v49, %v713_v19  ;;  %v583_v38 = vsel %vm1738_vm13, %v1658_v7, %v579_v59  ;;  %v638_v27 = vmul.f32 %v1712_v0, %v637_v15  ;;  %v696_v34 = vmul.f32 %v1726_v32, %v1656_v21 }
  0xea   : > { %v624_v18 = vadd.f32 %v1641_v13, %v623_v56  ;;  %vm626_vm14 = vweird.f32 %v1641_v13  ;;  %v682_v11 = vsub.f32 1.0, %v681_v10  ;;  %v587_v40 = vor.u32 1.1754944e-38, %v586_v17 }
  0xeb   : > { %v618_v46 = vsel %vm1690_vm3, %v1636_v22, %v613_v44  ;;  %vm671_vm15 = vweird.f32 %v1665_v25  ;;  %v730_v39 = vadd.f32 %v729_v33, %v1544_v48  ;;  %vm585_vm0 = vcmp.eq.f32.partialorder %v584_v14, 8.507059e+37  ;;  %vm1760_vm1 = vmor %vm625_vm12, %vm626_vm14 }
  0xec   : > { %v668_v7 = vmul.f32 %v1665_v25, %v667_v9  ;;  %v716_v26 = vmul.f32 %v573_v63, %v1366_v55  ;;  %v629_v36 = vand.u32 2147483647, %v1564_v52  ;;  %v588_v41 = vsel %vm585_vm0, %v587_v40, %v583_v38  ;;  %vm1794_vm8 = vmor %vm670_vm11, %vm671_vm15 }
  0xed   : > { %v731_v22 = vadd.f32 %v730_v39, %v1648_v43  ;;  %v639_v44 = vadd.f32 %v1712_v0, %v638_v27  ;;  %vm641_vm2 = vweird.f32 %v1712_v0  ;;  %v697_v48 = vsub.f32 1.0, %v696_v34 }
  0xee   : > { %v628_v55 = vsel %vm1760_vm1, %v1641_v13, %v624_v18  ;;  %v632_v51 = vor.u32 1.1754944e-38, %v631_v28  ;;  %v683_v62 = vmul.f32 %v1700_v60, %v682_v11  ;;  %v646_v52 = vand.u32 2147483648, %v1645_v4 }
  0xef   : > { %v717_v58 = vmul.f32 %v588_v41, %v1456_v5  ;;  %v732_v45 = vadd.f32 %v731_v22, %v716_v26  ;;  %vm640_vm3 = vweird.f32 %v1645_v4  ;;  %v644_v43 = vand.u32 2147483647, %v1645_v4 }
  0xf0   : > { %v669_v31 = vadd.f32 %v1665_v25, %v668_v7  ;;  %vm630_vm4 = vcmp.eq.f32.partialorder %v629_v36, 8.507059e+37  ;;  %vm685_vm5 = vweird.f32 %v1628_v8  ;;  %vm686_vm6 = vweird.f32 %v1700_v60  ;;  %vm1778_vm7 = vmor %vm640_vm3, %vm641_vm2 }
  0xf1   : > { %v633_v2 = vsel %vm630_vm4, %v632_v51, %v628_v55  ;;  %v733_v61 = vadd.f32 %v732_v45, %v717_v58  ;;  %v643_v5 = vsel %vm1778_vm7, %v1712_v0, %v639_v44  ;;  %v698_v49 = vmul.f32 %v1726_v32, %v697_v48  ;;  %vm1814_vm11 = vmor %vm685_vm5, %vm686_vm6 }
  0xf2   : > { %v676_v4 = vand.u32 2147483648, %v1597_v47  ;;  %v689_v1 = vand.u32 2147483647, %v1628_v8  ;;  %v691_v20 = vand.u32 2147483648, %v1628_v8  ;;  %v647_v23 = vor.u32 1.1754944e-38, %v646_v52 }
  0xf3   : > { %v719_v59 = vmul.f32 %v618_v46, %v1349_v42  ;;  %v684_v0 = vadd.f32 %v1700_v60, %v683_v62  ;;  %v734_v56 = vadd.f32 %v733_v61, %v1617_v6  ;;  %vm645_vm9 = vcmp.eq.f32.partialorder %v644_v43, 8.507059e+37 }
  0xf4   : > { %v673_v10 = vsel %vm1794_vm8, %v1665_v25, %v669_v31  ;;  %vm1805_vm10 = vcmp.eq.f32.partialorder %v674_v37, 8.507059e+37  ;;  %v720_v50 = vmul.f32 %v633_v2, %v1395_v16  ;;  %v648_v6 = vsel %vm645_vm9, %v647_v23, %v643_v5 }
  0xf5   : > { %v735_v19 = vadd.f32 %v734_v56, %v719_v59  ;;  %v699_v25 = vadd.f32 %v1726_v32, %v698_v49  ;;  %vm700_vm12 = vweird.f32 %v1656_v21  ;;  %vm701_vm13 = vweird.f32 %v1726_v32 }
  0xf6   : > { %v677_v47 = vor.u32 1.1754944e-38, %v676_v4  ;;  %vm690_vm14 = vcmp.eq.f32.partialorder %v689_v1, 8.507059e+37  ;;  %v692_v37 = vor.u32 1.1754944e-38, %v691_v20  ;;  %v706_v16 = vand.u32 2147483648, %v1656_v21  ;;  %vm702_vm15 = vmor %vm700_vm12, %vm701_vm13 }
  0xf7   : > { %v688_v8 = vsel %vm1814_vm11, %v1700_v60, %v684_v0  ;;  %v721_v14 = vmul.f32 %v648_v6, %v1473_v12  ;;  %v736_v15 = vadd.f32 %v735_v19, %v720_v50  ;;  %v704_v9 = vand.u32 2147483647, %v1656_v21 }
  0xf8   : > { %v678_v63 = vsel %vm1805_vm10, %v677_v47, %v673_v10  ;;  %v722_v28 = vmul.f32 %v1633_v35, %v1339_v30  ;;  %v703_v33 = vsel %vm702_vm15, %v1726_v32, %v699_v25  ;;  %v693_v38 = vsel %vm690_vm14, %v692_v37, %v688_v8  ;;  %v726_v32 = vld [vmem:[#allocation2] sm:$0x1] }
  0xf9   : > { %v737_v53 = vadd.f32 %v736_v15, %v721_v14  ;;  %v707_v27 = vor.u32 1.1754944e-38, %v706_v16  ;;  %v723_v34 = vmul.f32 %v678_v63, %v1381_v3  ;;  %vm705_vm0 = vcmp.eq.f32.partialorder %v704_v9, 8.507059e+37 }
  0xfa   : > { %v724_v18 = vmul.f32 %v693_v38, %v1437_v57 }
  0xfb   : > { %v738_v60 = vadd.f32 %v737_v53, %v722_v28  ;;  %v708_v12 = vsel %vm705_vm0, %v707_v27, %v703_v33 }
  0xfc   : > { %v725_v11 = vmul.f32 %v708_v12, %v1486_v24 }
  0xfd   : > { %v739_v21 = vadd.f32 %v738_v60, %v723_v34 }
  0xff   : > { %v740_v40 = vadd.f32 %v739_v21, %v724_v18 }
 0x101   : > { %v741_v46 = vadd.f32 %v740_v40, %v725_v11 }
 0x103   : > { %v742_v39 = vrot.slane %v741_v46, 4 }
 0x105   : > { %v743_v7 = vadd.f32 %v742_v39, %v741_v46 }
 0x107   : > { %v744_v30 = vrot.slane %v743_v7, 2 }
 0x109   : > { %v745_v35 = vadd.f32 %v744_v30, %v743_v7 }
 0x10b   : > { %v746_v26 = vrot.slane %v745_v35, 1 }
 0x10d   : > { %v747_v36 = vadd.f32 %v746_v26, %v745_v35  ;;  %753 = sbr.rel (%p936_p1) target bundleno = 435 (0x1b3), region = 48 }
 0x10f   : > { %v748_v41 = vadd.f32 %v747_v36, %v726_v32 }
 0x111   : > { %749 = vst [vmem:[#allocation2] sm:$0x1] %v748_v41 }
 0x112   : > { %v771_v3 = vld [vmem:[%s1936_s3 + $0x78] sm:$0xff]  ;;  %v770_v57 = vld [vmem:[%s1936_s3 + $0x70] sm:$0xff]  ;;  %v769_v24 = vld [vmem:[%s1936_s3 + $0x68] sm:$0xff] }
 0x113   : > { %773 = vmatpush.msra.mxu0 %v771_v3  ;;  %v768_v54 = vld [vmem:[%s1936_s3 + $0x60] sm:$0xff]  ;;  %v767_v22 = vld [vmem:[%s1936_s3 + $0x58] sm:$0xff]  ;;  %v766_v44 = vld [vmem:[%s1936_s3 + $0x50] sm:$0xff] }
 0x114   : > { %v765_v48 = vld [vmem:[%s1936_s3 + $0x48] sm:$0xff]  ;;  %v764_v55 = vld [vmem:[%s1936_s3 + $0x40] sm:$0xff]  ;;  %v763_v51 = vld [vmem:[%s1936_s3 + $0x38] sm:$0xff] }
 0x115   : > { %774 = vmatpush.msra.mxu0 %v770_v57  ;;  %v762_v62 = vld [vmem:[%s1936_s3 + $0x30] sm:$0xff]  ;;  %v761_v52 = vld [vmem:[%s1936_s3 + $0x28] sm:$0xff]  ;;  %v760_v58 = vld [vmem:[%s1936_s3 + $0x20] sm:$0xff] }
 0x116   : > { %v759_v45 = vld [vmem:[%s1936_s3 + $0x18] sm:$0xff]  ;;  %v758_v43 = vld [vmem:[%s1936_s3 + $0x10] sm:$0xff]  ;;  %v757_v13 = vld [vmem:[%s1936_s3 + $0x8] sm:$0xff] }
 0x117   : > { %775 = vmatpush.msra.mxu0 %v769_v24  ;;  %v756_v2 = vld [vmem:[%s1936_s3] sm:$0xff] }
 0x118   : > { %v754_v31 = vld [vmem:[#allocation2] sm:$0x1] }
 0x119   : > { %776 = vmatpush.msra.mxu0 %v768_v54  ;;  %v755_v61 = vmul.f32 0.00390625, %v754_v31  ;;  %v772_v5 = vld [vmem:[%s1937_s4] sm:$0x1] }
 0x11b   : > { %777 = vmatpush.msra.mxu0 %v767_v22 }
 0x11d   : > { %778 = vmatpush.msra.mxu0 %v766_v44 }
 0x11f   : > { %779 = vmatpush.msra.mxu0 %v765_v48 }
 0x121   : > { %780 = vmatpush.msra.mxu0 %v764_v55 }
 0x123   : > { %781 = vmatpush.msra.mxu0 %v763_v51 }
 0x125   : > { %782 = vmatpush.msra.mxu0 %v762_v62 }
 0x127   : > { %783 = vmatpush.msra.mxu0 %v761_v52 }
 0x129   : > { %784 = vmatpush.msra.mxu0 %v760_v58 }
 0x12b   : > { %785 = vmatpush.msra.mxu0 %v759_v45 }
 0x12d   : > { %786 = vmatpush.msra.mxu0 %v758_v43 }
 0x12f   : > { %787 = vmatpush.msra.mxu0 %v757_v13 }
 0x131   : > { %788 = vmatpush.msra.mxu0 %v756_v2 }
 0x132   : > { %789 = vmatmul.f32.vlgmr.msra.gmra.mxu0 %v755_v61 }
 0x1af   : > { %v790_v49 = vpop.f32.mrf.mxu0 }
 0x1b0   : > { %v791_v4 = vadd.f32 %v790_v49, %v772_v5 }
 0x1b2   : > { %793 = vst [vmem:[%s1297_s27] sm:$0x1] %v791_v4 }
 0x1b3 PF: > { %s803_s26 = scalar_lea.hbm %s1938_s5, %s1174_s22  ;;  %s805_s7 = sshll.u32 %s1297_s27, 4  ;;  %s806_s7 = int_to_ptr.vmem [resolvable:$true] %s805_s7 }
 0x1b4   : > { %s807_s8 = sshll.u32 %s803_s26, 4  ;;  %s795_s11 = scalar_lea.sflag [#allocation4], %s238_s10  ;;  %s808_s8 = int_to_ptr.hbm [resolvable:$true] %s807_s8 }
 0x1b5   : > { %s1106_s12 = sshra.s32 %s808_s8, 4  ;;  %s1112_s15 = scalar_lea.hbm %s1938_s5, 2  ;;  %s1107_s12 = int_to_ptr.hbm [resolvable:$true] %s1106_s12 }
 0x1b6   : > { %s1108_s21 = scalar_lea.hbm %s1107_s12, 1  ;;  %p1113_p6 = scmp.lt.s32.totalorder %s1107_s12, %s1938_s5 }
 0x1b7   : > { %p1109_p2 = scmp.ne.s32.totalorder %s1107_s12, %s1108_s21  ;;  %p1114_p7 = scmp.lt.s32.totalorder %s1112_s15, %s1108_s21 }
 0x1b9   : > { %p1110_p4 = pnand %p1109_p2, %p1268_p3  ;;  %p1115_p8 = por %p1114_p7, %p1113_p6 }
 0x1bb   : > { %p1111_p5 = pneg %p1110_p4 }
 0x1bd   : > { %p1116_p10 = pnand %p1115_p8, %p1111_p5 }
 0x1bf   : > { %1119 = shalt.err (!%p1116_p10)
}
 0x1c0   : > { %955 = dma.vmem_to_hbm [thread:$0]  (%p1268_p3), %s806_s7, 16, %s808_s8, %s795_s11  }
 0x1c1 PF: > { %p961_p11 = scmp.ge.s32.totalorder %s1186_s25, 2  ;;  %s819_s22 = sand.u32 1, %s1158_s18  }
 0x1c2   : > { %s820_s10 = scalar_lea.sflag [#allocation4], %s819_s22 }
 0x1c3   : > { %p958_p12 = pnand %p961_p11, %p1278_p9 }
 0x1c5   : > { %p959_p13 = pneg %p958_p12 }
 0x1c7   : > { %1153 = dma.done.wait (%p959_p13), %s820_s10, 16  }
 0x1c8   : > { %1155 = vsyncadd (%p959_p13), %s820_s10, 4294967280  ;;  %s18_s25 = sadd.s32 1, %s1186_s25   ;;  %s1987_s18 = smov %s1162_s19 }
 0x1c9   : > { %p15_p0 = scmp.ge.s32.totalorder %s18_s25, 6   ;;  %s1988_s19 = smov %s1166_s20 }
 0x1ca   : > { %s1989_s20 = smov %s1286_s9  ;;  %s1990_s21 = smov %s1178_s23 }
 0x1cb   : > { %s1991_s22 = smov %s1182_s24  ;;  %s1992_s23 = smov %s1995_s28 }
 0x1cc   : > { %s1993_s24 = smov %s1999_s29  ;;  %17 = sbr.rel (!%p15_p0) target bundleno = 5 (0x5), region = 83 }
 0x1d1   :  { %825 = vsyncpa [#allocation4], 1 }
 0x1d2   :  { %827 = vsyncpa [#allocation4 + $0x1], 1 }

</bundles_post_ra>
